<compile_context>
chip_gen: v7x
topology: tpu7x:2x2x1
jax: 0.10.0
libtpu: 0.0.40
codegen_flags: <defaults>
</compile_context>

<pallas_src>
import jax
import jax.numpy as jnp
from jax.experimental import pallas as pl
from jax.experimental.pallas import tpu as pltpu

_MIB = 1024 * 1024


def _round_up(x, k):
    return ((x + k - 1) // k) * k


def _vmem_capacity_bytes():
    """Physical VMEM per TensorCore (v5e/v6e: 128 MiB, v7x: 64 MiB)."""
    try:
        return int(pltpu.get_tpu_info().vmem_capacity_bytes)
    except Exception:
        return 64 * _MIB  # conservative fallback (v7x figure)


# ----------------------------------------------------------------------------
# Small path: whole (windowed) problem resident in VMEM, gridless invocation.
# ----------------------------------------------------------------------------
def _make_whole_vmem_kernel(batch, m, fuse, compute_dtype):
    def kernel(a1_ref, b1_ref, a2_ref, b2_ref, o_ref):
        a1, b1 = a1_ref[...], b1_ref[...]
        a2, b2 = a2_ref[...], b2_ref[...]
        if compute_dtype is not None:
            a1 = a1.astype(compute_dtype)
            b1 = b1.astype(compute_dtype)
            a2 = a2.astype(compute_dtype)
            b2 = b2.astype(compute_dtype)
        if fuse:
            # One MXU contraction instead of two:
            #   [a1; a2] (2b, c) @ [B1 | B2] (c, 2m) -> (2b, 2m)
            # The wanted products are the diagonal (batch, m) blocks.  Only
            # used when the matmul is latency/overhead-bound (the off-diagonal
            # blocks are wasted MACs); all concats/slices stay (8,128)-aligned
            # because the A window is already a standalone aligned array.
            a = jnp.concatenate([a1, a2], axis=0)          # (2b, c)
            b = jnp.concatenate([b1, b2], axis=1)          # (c, 2m)
            r = jnp.dot(a, b, preferred_element_type=jnp.float32)
            r1 = r[:batch, :m]                             # a1 @ B1
            r2 = r[batch:, m:]                             # a2 @ B2
        else:
            r1 = jnp.dot(a1, b1, preferred_element_type=jnp.float32)
            r2 = jnp.dot(a2, b2, preferred_element_type=jnp.float32)
        o_ref[...] = (r1 * r2).astype(o_ref.dtype)         # Hadamard on VPU

    return kernel


def _forward_whole_vmem(a1w, B1, a2w, B2, compute_dtype):
    batch, c = a1w.shape
    m = B1.shape[1]
    out_dtype = a1w.dtype
    itemsize = jnp.dtype(out_dtype).itemsize

    # Fused single-contraction trick only while latency-bound (<= 2 MMAC of
    # useful work); beyond that the 2x wasted off-diagonal MACs become visible
    # (most of all on v5e's 197 TF/s MXU).
    fuse = (batch % 8 == 0 and m % 128 == 0 and batch * c * m <= (1 << 21))

    # Inputs + output + f32 intermediates (r1/r2 or the fused (2b, 2m) block).
    footprint = (2 * batch * c + 2 * c * m + batch * m) * itemsize \
        + 4 * batch * m * 4
    vmem_limit = min(max(int(footprint * 1.5), 16 * _MIB),
                     _vmem_capacity_bytes())

    cost = pl.CostEstimate(
        flops=(4 if fuse else 2) * 2 * batch * c * m + batch * m,
        transcendentals=0,
        bytes_accessed=(2 * batch * c + 2 * c * m + batch * m) * itemsize,
    )

    vmem = pl.BlockSpec(memory_space=pltpu.MemorySpace.VMEM)
    return pl.pallas_call(
        _make_whole_vmem_kernel(batch, m, fuse, compute_dtype),
        out_shape=jax.ShapeDtypeStruct((batch, m), out_dtype),
        in_specs=[vmem, vmem, vmem, vmem],
        out_specs=vmem,
        compiler_params=pltpu.CompilerParams(
            vmem_limit_bytes=vmem_limit,
            # The (batch, c) windows arrive as wrapper slices of A1/A2; allow
            # XLA to fuse those slices into this call's operand DMAs so only
            # the window ever reaches HBM-read / VMEM.
            allow_input_fusion=[True, False, True, False],
        ),
        cost_estimate=cost,
    )(a1w, B1, a2w, B2)


# ----------------------------------------------------------------------------
# Tiled path for scaled-up shapes.
# ----------------------------------------------------------------------------
def _make_tiled_kernel(compute_dtype):
    def kernel(a1_ref, b1_ref, a2_ref, b2_ref, o_ref):
        a1, b1 = a1_ref[...], b1_ref[...]
        a2, b2 = a2_ref[...], b2_ref[...]
        if compute_dtype is not None:
            a1 = a1.astype(compute_dtype)
            b1 = b1.astype(compute_dtype)
            a2 = a2.astype(compute_dtype)
            b2 = b2.astype(compute_dtype)
        r1 = jnp.dot(a1, b1, preferred_element_type=jnp.float32)
        r2 = jnp.dot(a2, b2, preferred_element_type=jnp.float32)
        o_ref[...] = (r1 * r2).astype(o_ref.dtype)

    return kernel


def _forward_tiled(A1, B1, A2, B2, start, batch, block_m, block_n,
                   compute_dtype):
    n, c = A1.shape
    m = B1.shape[1]
    out_dtype = A1.dtype
    itemsize = jnp.dtype(out_dtype).itemsize
    vmem_cap = _vmem_capacity_bytes()

    # --- row tile -----------------------------------------------------------
    if block_m is not None:
        tm = block_m
    elif batch >= 512:
        tm = 512                                   # 2x256-MXU friendly
    else:
        tm = _round_up(batch, 8)                   # whole window in one row tile
    assert tm % 8 == 0 or tm == batch, "row tile must be sublane-aligned"

    # --- keep B resident? -----------------------------------------------------
    # If both B matrices (double-buffered) fit in <= 8 MiB of VMEM, pin them
    # with a constant index_map (DMA'd exactly once) and only tile the batch
    # axis.  Otherwise tile N and make it the OUTER grid axis so each
    # (c, tn) B block is constant across the inner batch sweep -> every B
    # element is still DMA'd exactly once (A, the smaller operand, is the one
    # refetched).
    b_resident = (block_n is None) and (2 * 2 * c * m * itemsize <= 8 * _MIB)

    if b_resident:
        tn = m
    elif block_n is not None:
        tn = block_n
    elif m <= 256:
        tn = m
    else:
        tn = min(1024, (m // 256) * 256)           # 256-aligned N tiles
    assert tn % 128 == 0 or tn == m, "column tile must be lane-aligned"

    gi = pl.cdiv(batch, tm)
    gj = pl.cdiv(m, tn)
    # v7x has 2 TensorCores: make sure the parallel grid has >= 2 blocks.
    if block_m is None and block_n is None and gi * gj < 2:
        if (not b_resident) and m > 256:
            tn = _round_up(pl.cdiv(m, 2), 128)
            gj = pl.cdiv(m, tn)
        elif batch >= 16:
            tm = _round_up(pl.cdiv(batch, 2), 8)
            gi = pl.cdiv(batch, tm)

    # --- A row window ---------------------------------------------------------
    if start % tm == 0:
        # Fold the window into the index_map: zero wrapper copies, only the
        # (batch, c) rows ever reach VMEM.  The trailing partial row block may
        # read rows past end_index / n; Pallas masks those rows on writeback.
        row0 = start // tm
        a1_in, a2_in = A1, A2
        allow_input_fusion = None
        a_row = lambda i: row0 + i
    else:
        # Unaligned start: slice in the wrapper and let XLA fuse the slice
        # into the pallas_call operand DMAs.
        a1_in = A1[start:start + batch]
        a2_in = A2[start:start + batch]
        allow_input_fusion = [True, False, True, False]
        a_row = lambda i: i

    # --- grid / specs ---------------------------------------------------------
    if b_resident:
        grid = (gi,)
        in_specs = [
            pl.BlockSpec((tm, c), lambda i: (a_row(i), 0)),
            pl.BlockSpec((c, m), lambda i: (0, 0)),      # resident, DMA'd once
            pl.BlockSpec((tm, c), lambda i: (a_row(i), 0)),
            pl.BlockSpec((c, m), lambda i: (0, 0)),      # resident, DMA'd once
        ]
        out_specs = pl.BlockSpec((tm, m), lambda i: (i, 0))
        dim_sem = ("parallel",)
        a_fetches = 1
    else:
        grid = (gj, gi)                                   # column axis OUTER
        in_specs = [
            pl.BlockSpec((tm, c), lambda j, i: (a_row(i), 0)),
            pl.BlockSpec((c, tn), lambda j, i: (0, j)),   # constant over inner i
            pl.BlockSpec((tm, c), lambda j, i: (a_row(i), 0)),
            pl.BlockSpec((c, tn), lambda j, i: (0, j)),
        ]
        out_specs = pl.BlockSpec((tm, tn), lambda j, i: (i, j))
        dim_sem = ("parallel", "parallel")
        a_fetches = gj                                    # A window refetched per column block

    # --- VMEM budget (incl. the two f32 (tm, tn) intermediates) ----------------
    b_block = (c * m) if b_resident else (c * tn)
    vmem_bytes = (
        2 * 2 * tm * c * itemsize        # A1/A2 tiles, double-buffered
        + 2 * 2 * b_block * itemsize     # B1/B2 blocks, double-buffered
        + 2 * tm * tn * itemsize         # output tile, double-buffered
        + 2 * tm * tn * 4                # r1 / r2 f32 intermediates
    )
    vmem_limit = min(max(int(vmem_bytes * 1.5), 16 * _MIB), vmem_cap)

    cost = pl.CostEstimate(
        flops=2 * 2 * batch * c * m + batch * m,
        transcendentals=0,
        bytes_accessed=(2 * a_fetches * batch * c + 2 * c * m + batch * m)
        * itemsize,
    )

    # TODO(synk): add a K ("arbitrary") grid axis with an f32 accumulator if c
    # ever grows beyond what a resident (tm, c) x (c, tn) operand pair allows.
    return pl.pallas_call(
        _make_tiled_kernel(compute_dtype),
        out_shape=jax.ShapeDtypeStruct((batch, m), out_dtype),
        grid=grid,
        in_specs=in_specs,
        out_specs=out_specs,
        compiler_params=pltpu.CompilerParams(
            dimension_semantics=dim_sem,
            allow_input_fusion=allow_input_fusion,
            vmem_limit_bytes=vmem_limit,
        ),
        cost_estimate=cost,
    )(a1_in, B1, a2_in, B2)


# ----------------------------------------------------------------------------
# Public entry point (matches SGD_HadDec.forward semantics).
# ----------------------------------------------------------------------------
def sgd_had_dec_forward(A1, B1, A2, B2, start_index, end_index, *,
                        block_m=None, block_n=None, compute_dtype=None):
    """Pallas implementation of SGD_HadDec.forward.

    start_index / end_index must be static Python ints (as in the PyTorch
    module, where the slice length fixes the output's leading dim).
    compute_dtype=jnp.bfloat16 optionally casts MXU operands (f32 accumulate).
    """
    start = int(start_index)
    end = int(end_index)
    batch = end - start
    assert batch > 0, "end_index must be > start_index"
    n, c = A1.shape
    m = B1.shape[1]
    itemsize = jnp.dtype(A1.dtype).itemsize

    # Windowed whole-problem footprint: only the (batch, c) A rows (not all n)
    # plus B's, the output and the f32 intermediates.
    whole_bytes = (2 * batch * c + 2 * c * m + batch * m) * itemsize \
        + 4 * batch * m * 4
    # Gridless path while this fits a healthy slice of VMEM:
    # ~16 MiB on v7x (64 MiB physical), 24 MiB on v5e/v6e (128 MiB physical).
    threshold = min(_vmem_capacity_bytes() // 4, 24 * _MIB)

    if block_m is None and block_n is None and whole_bytes <= threshold:
        return _forward_whole_vmem(A1[start:end], B1, A2[start:end], B2,
                                   compute_dtype)
    return _forward_tiled(A1, B1, A2, B2, start, batch, block_m, block_n,
                          compute_dtype)


if __name__ == "__main__":
    def ref_fwd(A1, B1, A2, B2, s, e):
        return (A1[s:e] @ B1) * (A2[s:e] @ B2)

    # --- Test 1: the module's tiny deployed shape --------------------------
    # Gridless whole-VMEM path, unaligned start, fused single contraction.
    n, c, m = 16, 32, 128
    s1, e1 = 2, 10                                   # batch = 8
    k = jax.random.split(jax.random.PRNGKey(0), 4)
    A1 = jax.random.uniform(k[0], (n, c), dtype=jnp.float32)
    B1 = jax.random.uniform(k[1], (c, m), dtype=jnp.float32)
    A2 = jax.random.uniform(k[2], (n, c), dtype=jnp.float32)
    B2 = jax.random.uniform(k[3], (c, m), dtype=jnp.float32)

    fwd1 = jax.jit(lambda a1, b1, a2, b2:
                   sgd_had_dec_forward(a1, b1, a2, b2, s1, e1))
    out1 = jax.block_until_ready(fwd1(A1, B1, A2, B2))
    ref1 = ref_fwd(A1, B1, A2, B2, s1, e1)
    assert out1.shape == (e1 - s1, m)
    assert jnp.allclose(out1, ref1, rtol=1e-3, atol=1e-3), \
        float(jnp.max(jnp.abs(out1 - ref1)))

    # --- Test 2: tiled path, resident B, unaligned start -------------------
    # batch % tm != 0 and start + batch == n -> exercises the padded trailing
    # row block (input padding read, output rows masked on writeback).
    n2, c2, m2 = 600, 256, 2048
    s2, e2 = 64, 600                                 # batch = 536, tm = 512
    k = jax.random.split(jax.random.PRNGKey(1), 4)
    A1b = jax.random.uniform(k[0], (n2, c2), dtype=jnp.float32)
    B1b = jax.random.uniform(k[1], (c2, m2), dtype=jnp.float32)
    A2b = jax.random.uniform(k[2], (n2, c2), dtype=jnp.float32)
    B2b = jax.random.uniform(k[3], (c2, m2), dtype=jnp.float32)

    fwd2 = jax.jit(lambda a1, b1, a2, b2:
                   sgd_had_dec_forward(a1, b1, a2, b2, s2, e2))
    out2 = jax.block_until_ready(fwd2(A1b, B1b, A2b, B2b))
    ref2 = ref_fwd(A1b, B1b, A2b, B2b, s2, e2)
    assert out2.shape == (e2 - s2, m2)
    assert jnp.allclose(out2, ref2, rtol=1e-2, atol=1e-2), \
        float(jnp.max(jnp.abs(out2 - ref2)))

    # --- Test 3: tiled path, non-resident B (column-outer grid) ------------
    # Aligned start folded into the index_map, bf16 MXU operands.
    n3, c3, m3 = 1024, 256, 4096
    s3, e3 = 512, 1024                               # batch = 512, start % tm == 0
    k = jax.random.split(jax.random.PRNGKey(2), 4)
    A1c = jax.random.uniform(k[0], (n3, c3), dtype=jnp.float32)
    B1c = jax.random.uniform(k[1], (c3, m3), dtype=jnp.float32)
    A2c = jax.random.uniform(k[2], (n3, c3), dtype=jnp.float32)
    B2c = jax.random.uniform(k[3], (c3, m3), dtype=jnp.float32)

    fwd3 = jax.jit(lambda a1, b1, a2, b2: sgd_had_dec_forward(
        a1, b1, a2, b2, s3, e3, compute_dtype=jnp.bfloat16))
    out3 = jax.block_until_ready(fwd3(A1c, B1c, A2c, B2c))
    ref3 = ref_fwd(A1c, B1c, A2c, B2c, s3, e3)
    assert out3.shape == (e3 - s3, m3)
    assert jnp.allclose(out3, ref3, rtol=2e-2, atol=1.0), \
        float(jnp.max(jnp.abs(out3 - ref3)))

    print("KERNEL_OK")
</pallas_src>

<mosaic_0001>
module attributes {stable_mosaic.version = 11 : i64} {
  func.func @kernel(%arg0: memref<8x32xf32, #tpu.memory_space<vmem>>, %arg1: memref<32x128xf32, #tpu.memory_space<vmem>>, %arg2: memref<8x32xf32, #tpu.memory_space<vmem>>, %arg3: memref<32x128xf32, #tpu.memory_space<vmem>>, %arg4: memref<8x128xf32, #tpu.memory_space<vmem>>) attributes {dimension_semantics = [], scalar_prefetch = 0 : i64, scratch_operands = 0 : i64, tpu.core_type = #tpu.core_type<tc>} {
    %c0 = arith.constant 0 : index
    %c0_0 = arith.constant 0 : index
    %0 = vector.load %arg0[%c0, %c0_0] : memref<8x32xf32, #tpu.memory_space<vmem>>, vector<8x32xf32>
    %c0_1 = arith.constant 0 : index
    %c0_2 = arith.constant 0 : index
    %1 = vector.load %arg1[%c0_1, %c0_2] : memref<32x128xf32, #tpu.memory_space<vmem>>, vector<32x128xf32>
    %c0_3 = arith.constant 0 : index
    %c0_4 = arith.constant 0 : index
    %2 = vector.load %arg2[%c0_3, %c0_4] : memref<8x32xf32, #tpu.memory_space<vmem>>, vector<8x32xf32>
    %c0_5 = arith.constant 0 : index
    %c0_6 = arith.constant 0 : index
    %3 = vector.load %arg3[%c0_5, %c0_6] : memref<32x128xf32, #tpu.memory_space<vmem>>, vector<32x128xf32>
    %4 = tpu.concatenate %0, %2 in 0 : vector<8x32xf32>, vector<8x32xf32> -> vector<16x32xf32>
    %5 = tpu.concatenate %1, %3 in 1 : vector<32x128xf32>, vector<32x128xf32> -> vector<32x256xf32>
    %cst = arith.constant dense<0.000000e+00> : vector<16x256xf32>
    %6 = tpu.matmul %4, %5, %cst {dimension_numbers = #tpu.dot_dimension_numbers<[1], [0], [0], [1], [0, 0, 1, 1], [], []>} : vector<16x32xf32>, vector<32x256xf32>, vector<16x256xf32> -> vector<16x256xf32>
    %7 = vector.extract_strided_slice %6 {offsets = [0, 0], sizes = [8, 128], strides = [1, 1]} : vector<16x256xf32> to vector<8x128xf32>
    %8 = vector.extract_strided_slice %6 {offsets = [8, 128], sizes = [8, 128], strides = [1, 1]} : vector<16x256xf32> to vector<8x128xf32>
    %9 = arith.mulf %7, %8 : vector<8x128xf32>
    %c0_7 = arith.constant 0 : index
    %c0_8 = arith.constant 0 : index
    %10 = vector.load %arg4[%c0_7, %c0_8] : memref<8x128xf32, #tpu.memory_space<vmem>>, vector<8x128xf32>
    tpu.vector_store %arg4[%c0_7, %c0_8], %9 {strides = array<i32>} : memref<8x128xf32, #tpu.memory_space<vmem>>, vector<8x128xf32>,
    return
  }
}

</mosaic_0001>

<bundles_post_ra>
// kernel: _lambda_.2
= control target key start
LH: loop header
LB: loop body
LE: loop exit
PB: predicated region body
PF: predicated region fallthrough
CT: control target
= control target key end

     0   :  { %9 = vsyncpa [#allocation13], 0  ;;  %s459_s0 = inlined_call_operand.hbm [shape: f32[32,128], index: 0, kind: input, shape index: {}]   ;;  %s460_s1 = inlined_call_operand.hbm [shape: f32[32,128], index: 1, kind: input, shape index: {}]   ;;  %s461_s2 = inlined_call_operand.hbm [shape: f32[16,32], index: 2, kind: input, shape index: {}]   ;;  %s462_s3 = inlined_call_operand.hbm [shape: f32[16,32], index: 3, kind: input, shape index: {}]   ;;  %s463_s4 = inlined_call_operand.hbm [shape: f32[8,128], index: 4, kind: output, shape index: {}]  }
   0x1   :  { %10 = vsyncpa [#allocation16], 0 }
   0x2   :  { %11 = vsyncpa [#allocation19], 0 }
   0x3   :  { %12 = vsyncpa [#allocation14], 0  ;;  %s340_s15 = smov [#allocation15]   ;;  %s341_s17 = smov [#allocation12]  }
   0x4   :  { %s30_s16 = sshll.u32 %s340_s15, 4  ;;  %s18_s18 = sshll.u32 %s341_s17, 4  ;;  %s31_s16 = int_to_ptr.vmem [resolvable:$true] %s30_s16  ;;  %s373_s18 = int_to_ptr.vmem [resolvable:$true] %s18_s18 }
   0x5   :  { %s222_s21 = scalar_lea.hbm %s459_s0, 512 }
   0x6   :  { %p223_p0 = scmp.ne.s32.totalorder %s459_s0, %s222_s21  ;;  %p226_p1 = scmp.lt.u32.totalorder %s222_s21, %s459_s0 }
   0x8   :  { %p228_p2 = pnand %p226_p1, %p223_p0 }
   0xa   :  { %231 = shalt.err (!%p228_p2)
}
   0xb   :  { %s232_s26 = scalar_lea.vmem %s31_s16, 512  ;;  %p237_p4 = scmp.lt.s32.totalorder %s31_s16, %s31_s16 }
   0xc   :  { %p233_p3 = scmp.ne.s32.totalorder %s31_s16, %s232_s26  ;;  %p238_p5 = scmp.lt.s32.totalorder %s232_s26, %s232_s26 }
   0xe   :  { %p239_p6 = por %p238_p5, %p237_p4 }
  0x10   :  { %p240_p7 = pnand %p239_p6, %p233_p3 }
  0x12   :  { %243 = shalt.err (!%p240_p7)
}
  0x13   :  { %s342_s27 = smov 128   ;;  %s343_s28 = smov 8  }
  0x14   :  { %36 = dma.hbm_to_vmem [thread:$0]  %s459_s0, 512, %s31_s16, [#allocation16], %s342_s27, %s342_s27, %s343_s28  }
  0x15   :  { %s244_s7 = scalar_lea.hbm %s462_s3, 256 }
  0x16   :  { %p245_p8 = scmp.ne.s32.totalorder %s462_s3, %s244_s7  ;;  %p248_p9 = scmp.lt.u32.totalorder %s244_s7, %s462_s3 }
  0x18   :  { %p250_p10 = pnand %p248_p9, %p245_p8 }
  0x1a   :  { %253 = shalt.err (!%p250_p10)
}
  0x1b   :  { %s254_s12 = scalar_lea.vmem %s373_s18, 256  ;;  %p259_p12 = scmp.lt.s32.totalorder %s373_s18, %s373_s18 }
  0x1c   :  { %p255_p11 = scmp.ne.s32.totalorder %s373_s18, %s254_s12  ;;  %p260_p13 = scmp.lt.s32.totalorder %s254_s12, %s254_s12 }
  0x1e   :  { %p261_p0 = por %p260_p13, %p259_p12 }
  0x20   :  { %p262_p1 = pnand %p261_p0, %p255_p11 }
  0x22   :  { %265 = shalt.err (!%p262_p1)
}
  0x23   :  { %24 = dma.hbm_to_vmem [thread:$0]  %s462_s3, 256, %s373_s18, [#allocation13], %s342_s27, %s342_s27, %s343_s28  }
  0x24   :  { %s344_s14 = smov [#allocation17]   ;;  %s345_s16 = smov [#allocation18]  }
  0x25   :  { %s42_s15 = sshll.u32 %s344_s14, 4  ;;  %s54_s17 = sshll.u32 %s345_s16, 4  ;;  %s43_s15 = int_to_ptr.vmem [resolvable:$true] %s42_s15  ;;  %s410_s17 = int_to_ptr.vmem [resolvable:$true] %s54_s17 }
  0x26   :  { %s266_s21 = scalar_lea.hbm %s461_s2, 256 }
  0x27   :  { %p267_p2 = scmp.ne.s32.totalorder %s461_s2, %s266_s21  ;;  %p270_p3 = scmp.lt.u32.totalorder %s266_s21, %s461_s2 }
  0x29   :  { %p272_p4 = pnand %p270_p3, %p267_p2 }
  0x2b   :  { %275 = shalt.err (!%p272_p4)
}
  0x2c   :  { %s276_s3 = scalar_lea.vmem %s43_s15, 256  ;;  %p281_p6 = scmp.lt.s32.totalorder %s43_s15, %s43_s15 }
  0x2d   :  { %p277_p5 = scmp.ne.s32.totalorder %s43_s15, %s276_s3  ;;  %p282_p7 = scmp.lt.s32.totalorder %s276_s3, %s276_s3 }
  0x2f   :  { %p283_p8 = por %p282_p7, %p281_p6 }
  0x31   :  { %p284_p9 = pnand %p283_p8, %p277_p5 }
  0x33   :  { %287 = shalt.err (!%p284_p9)
}
  0x34   :  { %48 = dma.hbm_to_vmem [thread:$0]  %s461_s2, 256, %s43_s15, [#allocation16], %s342_s27, %s342_s27, %s343_s28  }
  0x35   :  { %s288_s5 = scalar_lea.hbm %s460_s1, 512 }
  0x36   :  { %p289_p10 = scmp.ne.s32.totalorder %s460_s1, %s288_s5  ;;  %p292_p11 = scmp.lt.u32.totalorder %s288_s5, %s460_s1 }
  0x38   :  { %p294_p12 = pnand %p292_p11, %p289_p10 }
  0x3a   :  { %297 = shalt.err (!%p294_p12)
}
  0x3b   :  { %s298_s10 = scalar_lea.vmem %s410_s17, 512  ;;  %p303_p0 = scmp.lt.s32.totalorder %s410_s17, %s410_s17 }
  0x3c   :  { %p299_p13 = scmp.ne.s32.totalorder %s410_s17, %s298_s10  ;;  %p304_p1 = scmp.lt.s32.totalorder %s298_s10, %s298_s10 }
  0x3e   :  { %p305_p2 = por %p304_p1, %p303_p0 }
  0x40   :  { %p306_p3 = pnand %p305_p2, %p299_p13 }
  0x42   :  { %309 = shalt.err (!%p306_p3)
}
  0x43   :  { %60 = dma.hbm_to_vmem [thread:$0]  %s460_s1, 512, %s410_s17, [#allocation19], %s342_s27, %s342_s27, %s343_s28  }
  0x44   :  { %332 = dma.done.wait [#allocation13], 256  }
  0x45   :  { %333 = vsyncadd [#allocation13], 4294967040 }
  0x46   :  { %334 = dma.done.wait [#allocation16], 768  }
  0x47   :  { %335 = vsyncadd [#allocation16], 4294966528 }
  0x48   :  { %336 = dma.done.wait [#allocation19], 512  }
  0x49   :  { %337 = vsyncadd [#allocation19], 4294966784  ;;  %v346_v0 = vmov 0.0   ;;  %v95_v1 = vld [vmem:[#allocation18] sm:$0xff]  ;;  %v96_v2 = vld [vmem:[#allocation18 + $0x8] sm:$0xff]  ;;  %vm76_vm0 = vcmask 1041408  }
  0x4a   :  { %170 = vmatprep.mubr.f32.mxu0 %v346_v0  ;;  %175 = vmatprep.mubr.f32.mxu1 %v346_v0  ;;  %v90_v3 = vld [vmem:[#allocation15] sm:$0xff]  ;;  %v202_v4 = vpack.c.bf16 %v96_v2, %v95_v1  ;;  %v91_v5 = vld [vmem:[#allocation15 + $0x8] sm:$0xff]  ;;  %v92_v10 = vld [vmem:[#allocation15 + $0x10] sm:$0xff]  ;;  %vm99_vm1 = vcmask 261120   ;;  %s347_s1 = smov [#allocation20]  }
  0x4b   :  { %v97_v6 = vld [vmem:[#allocation18 + $0x10] sm:$0xff]  ;;  %v98_v7 = vld [vmem:[#allocation18 + $0x18] sm:$0xff]  ;;  %v204_v8 = vpack.c.bf16 %v91_v5, %v90_v3  ;;  %v93_v11 = vld [vmem:[#allocation15 + $0x18] sm:$0xff]  ;;  %s189_s27 = sshll.u32 %s347_s1, 4  ;;  %s190_s27 = int_to_ptr.vmem [resolvable:$true] %s189_s27 }
  0x4c   :  { %v206_v9 = vpack.c.bf16 %v98_v7, %v97_v6  ;;  %v73_v12 = vld [vmem:[#allocation12] sm:$0xff]  ;;  %203 = vmatprep.subr.bf16.mxu0 %v202_v4  ;;  %210 = vmatprep.subr.bf16.mxu1 %v202_v4  ;;  %v75_v13 = vld [vmem:[#allocation12 + $0x8] sm:$0xff]  ;;  %v81_v14 = vld [vmem:[#allocation17] sm:$0xff]  ;;  %v208_v16 = vpack.c.bf16 %v93_v11, %v92_v10  ;;  %s310_s28 = scalar_lea.vmem %s190_s27, 128  ;;  %p315_p5 = scmp.lt.s32.totalorder %s190_s27, %s190_s27 }
  0x4d   :  { %v83_v15 = vld [vmem:[#allocation17 + $0x8] sm:$0xff]  ;;  %205 = vmatpush1.bf16.msra.mxu0 %v204_v8  ;;  %212 = vmatpush1.bf16.msra.mxu1 %v204_v8  ;;  %v77_v17 = vsel %vm76_vm0, %v75_v13, %v73_v12  ;;  %p311_p4 = scmp.ne.s32.totalorder %s190_s27, %s310_s28  ;;  %p316_p6 = scmp.lt.s32.totalorder %s310_s28, %s310_s28 }
  0x4e   :  { %v85_v18 = vsel %vm76_vm0, %v83_v15, %v81_v14  ;;  %207 = vmatprep.subr.bf16.mxu0 %v206_v9  ;;  %211 = vmatprep.subr.bf16.mxu1 %v206_v9  ;;  %v78_v19 = vrot.slane %v77_v17, 2 }
  0x4f   :  { %v86_v20 = vrot.slane %v85_v18, 2  ;;  %p317_p7 = por %p316_p6, %p315_p5 }
  0x51   :  { %209 = vmatpush1.bf16.msra.mxu0 %v208_v16  ;;  %213 = vmatpush1.bf16.msra.mxu1 %v208_v16  ;;  %p318_p8 = pnand %p317_p7, %p311_p4 }
  0x54   :  { %200 = vmatmul.mubr.msk.f32.vlgmr.msra.gmra.mrb[0].mxu0 %vm99_vm1, %v78_v19  ;;  %201 = vmatmul.mubr.msk.f32.vlgmr.msra.gmra.mrb[0].mxu1 %vm99_vm1, %v86_v20 }
 0x127   :  { %v172_v21 = vpop.f32.mrb[0].mxu0  ;;  %v177_v22 = vpop.f32.mrb[0].mxu1 }
 0x128   :  { %v174_v23 = vpop.f32.mrb[1].mxu0  ;;  %v178_v24 = vpop.f32.mrb[1].mxu1 }
 0x129   :  { %v181_v25 = vmul.f32 %v178_v24, %v172_v21 }
 0x12b   :  { %182 = vst [vmem:[#allocation20] sm:$0xff] %v181_v25 }
 0x12c   :  { %321 = shalt.err (!%p318_p8)
}
 0x12d   :  { %s322_s13 = scalar_lea.hbm %s463_s4, 128 }
 0x12e   :  { %p323_p9 = scmp.ne.s32.totalorder %s463_s4, %s322_s13  ;;  %p326_p10 = scmp.lt.u32.totalorder %s322_s13, %s463_s4 }
 0x130   :  { %p328_p11 = pnand %p326_p10, %p323_p9 }
 0x132   :  { %331 = shalt.err (!%p328_p11)
}
 0x133   :  { %192 = dma.vmem_to_hbm [thread:$0]  %s190_s27, 128, %s463_s4, [#allocation14]  }
 0x134   :  { %338 = dma.done.wait [#allocation14], 128  }
 0x135   :  { %339 = vsyncadd [#allocation14], 4294967168 }
 0x136   :  { %196 = vsyncpa [#allocation13], 1 }
 0x137   :  { %197 = vsyncpa [#allocation16], 1 }
 0x138   :  { %198 = vsyncpa [#allocation19], 1 }
 0x139   :  { %199 = vsyncpa [#allocation14], 1 }

</bundles_post_ra>
